<compile_context>
chip_gen: v5e
topology: v5e:2x2
jax: 0.10.0
libtpu: 0.0.40
codegen_flags: <defaults>
</compile_context>

<pallas_src>
import functools

import jax
import jax.numpy as jnp
from jax.experimental import pallas as pl
from jax.experimental.pallas import tpu as pltpu


def _round_up(a, b):
    return (a + b - 1) // b * b


def _swiglu_kernel(x_ref, wg_ref, wu_ref, wd_ref, o_ref, acc_ref, *, n_sub):
    """One (token-tile i, intermediate-block k) grid step.

    x_ref  : (tm, H)      token tile (native dtype, e.g. bf16)
    wg_ref : (H, ti)      gate_proj weight block for this I-block
    wu_ref : (H, ti)      up_proj   weight block for this I-block
    wd_ref : (ti, H)      down_proj weight rows for this I-block
    o_ref  : (tm, H)      output tile (resident across k)
    acc_ref: (tm, H) f32  VMEM accumulator scratch
    """
    k = pl.program_id(1)

    @pl.when(k == 0)
    def _init():
        acc_ref[...] = jnp.zeros_like(acc_ref)

    ti = wd_ref.shape[0]
    tc = ti // n_sub
    x = x_ref[...]

    contrib = None
    # Straight-line sub-chunking: within one basic block the LLO scheduler can
    # overlap the MXU matmuls of chunk c+1 with the SiLU/cast epilogue
    # (VPU/EUP) and the down-proj of chunk c.
    for c in range(n_sub):
        lo = c * tc
        g = jnp.dot(x, wg_ref[:, lo:lo + tc], preferred_element_type=jnp.float32)
        u = jnp.dot(x, wu_ref[:, lo:lo + tc], preferred_element_type=jnp.float32)
        h = g * jax.nn.sigmoid(g) * u            # SiLU(gate) * up, in f32
        d = jnp.dot(h.astype(wd_ref.dtype), wd_ref[lo:lo + tc, :],
                    preferred_element_type=jnp.float32)
        contrib = d if contrib is None else contrib + d

    acc_ref[...] += contrib                      # one accumulator RMW per step

    @pl.when(k == pl.num_programs(1) - 1)
    def _finalize():
        o_ref[...] = acc_ref[...].astype(o_ref.dtype)


def _tpu_generation():
    try:
        kind = jax.devices()[0].device_kind.lower()
    except Exception:
        return None
    for gen in (7, 6, 5):
        if f"v{gen}" in kind:
            return gen
    return None


# Roofline-derived defaults per TPU generation.
_GEN_DEFAULTS = {
    5: dict(tm=256, ti=256, vmem_cap=128 << 20),   # v5e: ridge ~240 flops/B
    6: dict(tm=768, ti=1024, vmem_cap=128 << 20),  # v6e: ridge ~650 flops/B
    7: dict(tm=512, ti=256, vmem_cap=64 << 20),    # v7x: ridge ~310, 64 MiB VMEM
}
_FALLBACK = dict(tm=256, ti=512, vmem_cap=128 << 20)


def swiglu_mlp(x, w_gate, w_up, w_down, *, tm=None, ti=None):
    """SwiGLU MLP: down_proj(silu(x @ w_gate) * (x @ w_up)).

    x: (..., H); w_gate/w_up: (H, I) = PyTorch weight.T; w_down: (I, H).
    tm / ti default to generation-specific roofline-tuned values.
    """
    orig_shape = x.shape
    H = orig_shape[-1]
    x2 = x.reshape(-1, H)
    M = x2.shape[0]
    I = w_gate.shape[1]
    assert w_gate.shape == (H, I) and w_up.shape == (H, I) and w_down.shape == (I, H)

    gen = _tpu_generation()
    defaults = _GEN_DEFAULTS.get(gen, _FALLBACK)
    if tm is None:
        tm = defaults["tm"]
    if ti is None:
        ti = defaults["ti"]
    vmem_cap = defaults["vmem_cap"]

    bx = x2.dtype.itemsize
    bw = w_gate.dtype.itemsize

    # Packed sublane multiple for the activation dtype: 8 f32, 16 bf16, 32 int8.
    sub = max(8, 32 // max(bx, 1))

    # ---- tile selection ----
    tm = _round_up(min(tm, _round_up(M, sub)), sub)
    ti = min(ti, I)
    if ti < I:
        ti = _round_up(ti, 128)       # streamed blocks stay lane-aligned

    def _n_sub(ti_):
        return 2 if (ti_ >= 256 and ti_ % 256 == 0) else 1

    def _budget(tm_, ti_):
        tc_ = max(ti_ // _n_sub(ti_), 128)
        return (2 * tm_ * H * bx       # x tile (double buffered)
                + 4 * H * ti_ * bw     # gate + up weight blocks (double buffered)
                + 2 * ti_ * H * bw     # down-proj weight block (double buffered)
                + 2 * tm_ * H * bx     # output tile (double buffered)
                + tm_ * H * 4          # f32 accumulator scratch
                + 2 * tm_ * tc_ * 16)  # f32 gate/up/hidden intermediates

    # Shrink tiles until the working set fits the physical VMEM with headroom.
    while _budget(tm, ti) > vmem_cap - (8 << 20):
        if ti > 256:
            ti = max(256, _round_up(ti // 2, 128))
        elif tm > 2 * sub:
            tm = max(sub, _round_up(tm // 2, sub))
        else:
            break

    # v7x megacore: guarantee >= 2 token blocks so both TensorCores get work.
    if gen == 7 and _round_up(M, tm) // tm < 2 and tm >= 2 * sub:
        tm = max(sub, _round_up(tm // 2, sub))

    Mp = _round_up(M, tm)
    Ip = _round_up(I, ti)
    nk = Ip // ti
    n_sub = _n_sub(ti)

    # ---- zero padding (exact for SwiGLU: silu(0) * 0 == 0). No-op when the
    #      model shapes already divide the tiles (the common case). ----
    if Mp != M:
        x2 = jnp.pad(x2, ((0, Mp - M), (0, 0)))
    if Ip != I:
        w_gate = jnp.pad(w_gate, ((0, 0), (0, Ip - I)))
        w_up = jnp.pad(w_up, ((0, 0), (0, Ip - I)))
        w_down = jnp.pad(w_down, ((0, Ip - I), (0, 0)))

    grid = (Mp // tm, nk)

    # Exact scoped-VMEM budget, clamped to physical capacity minus headroom.
    vmem_limit = int(_budget(tm, ti)) + (8 << 20)
    vmem_limit = min(max(vmem_limit, 32 << 20), vmem_cap - (2 << 20))

    cost = pl.CostEstimate(
        flops=6 * M * I * H,
        transcendentals=M * I,
        bytes_accessed=3 * H * I * bw + 2 * M * H * bx,
    )

    out = pl.pallas_call(
        functools.partial(_swiglu_kernel, n_sub=n_sub),
        out_shape=jax.ShapeDtypeStruct((Mp, H), x2.dtype),
        grid_spec=pltpu.PrefetchScalarGridSpec(
            num_scalar_prefetch=0,
            grid=grid,
            in_specs=[
                pl.BlockSpec((tm, H), lambda i, k: (i, 0)),   # x row tile
                pl.BlockSpec((H, ti), lambda i, k: (0, k)),   # gate weight block
                pl.BlockSpec((H, ti), lambda i, k: (0, k)),   # up weight block
                pl.BlockSpec((ti, H), lambda i, k: (k, 0)),   # down weight block
            ],
            out_specs=pl.BlockSpec((tm, H), lambda i, k: (i, 0)),
            scratch_shapes=[pltpu.VMEM((tm, H), jnp.float32)],
        ),
        compiler_params=pltpu.CompilerParams(
            dimension_semantics=("parallel", "arbitrary"),
            vmem_limit_bytes=vmem_limit,
        ),
        cost_estimate=cost,
    )(x2, w_gate, w_up, w_down)

    return out[:M].reshape(orig_shape)


def swiglu_mlp_ref(x, w_gate, w_up, w_down):
    g = x @ w_gate
    u = x @ w_up
    return (g * jax.nn.sigmoid(g) * u) @ w_down


if __name__ == "__main__":
    # Small shapes consistent with the module: (batch, seq, hidden), intermediate.
    batch, seq = 2, 8
    hidden_size = 32
    intermediate_size = 64

    key = jax.random.PRNGKey(0)
    kx, kg, ku, kd = jax.random.split(key, 4)

    x = jax.random.normal(kx, (batch, seq, hidden_size), dtype=jnp.float32)
    # Deterministic synthetic weights, stored as (in, out) = PyTorch weight.T.
    w_gate = jax.random.normal(kg, (hidden_size, intermediate_size), jnp.float32) * 0.05
    w_up = jax.random.normal(ku, (hidden_size, intermediate_size), jnp.float32) * 0.05
    w_down = jax.random.normal(kd, (intermediate_size, hidden_size), jnp.float32) * 0.05

    # f32 path: matches the f32 reference tightly.
    out_f32 = jax.block_until_ready(swiglu_mlp(x, w_gate, w_up, w_down))
    ref_f32 = swiglu_mlp_ref(x, w_gate, w_up, w_down)
    assert out_f32.shape == (batch, seq, hidden_size)
    assert jnp.allclose(out_f32, ref_f32, atol=1e-5, rtol=1e-5), "f32 mismatch vs reference"

    # bf16 path: the MXU-native configuration the kernel is optimized for.
    xb, wgb, wub, wdb = (a.astype(jnp.bfloat16) for a in (x, w_gate, w_up, w_down))
    out_bf16 = jax.block_until_ready(swiglu_mlp(xb, wgb, wub, wdb))
    ref_bf16 = swiglu_mlp_ref(xb.astype(jnp.float32), wgb.astype(jnp.float32),
                              wub.astype(jnp.float32), wdb.astype(jnp.float32))
    assert out_bf16.shape == (batch, seq, hidden_size) and out_bf16.dtype == jnp.bfloat16
    assert jnp.allclose(out_bf16.astype(jnp.float32), ref_bf16, atol=2e-2, rtol=2e-2), \
        "bf16 mismatch vs reference"

    print("KERNEL_OK")
</pallas_src>

<mosaic_0001>
module attributes {stable_mosaic.version = 11 : i64} {
  func.func @_swiglu_kernel(%arg0: i32, %arg1: i32, %arg2: memref<16x32xf32, #tpu.memory_space<vmem>>, %arg3: memref<32x64xf32, #tpu.memory_space<vmem>>, %arg4: memref<32x64xf32, #tpu.memory_space<vmem>>, %arg5: memref<64x32xf32, #tpu.memory_space<vmem>>, %arg6: memref<16x32xf32, #tpu.memory_space<vmem>>, %arg7: memref<16x32xf32, #tpu.memory_space<vmem>>) attributes {dimension_semantics = [#tpu.dimension_semantics<parallel>, #tpu.dimension_semantics<arbitrary>], iteration_bounds = array<i64: 1, 1>, scalar_prefetch = 0 : i64, scratch_operands = 1 : i64, tpu.core_type = #tpu.core_type<tc>, window_params = [{transform_indices = @transform_0, window_bounds = array<i64: 16, 32>}, {transform_indices = @transform_1, window_bounds = array<i64: 32, 64>}, {transform_indices = @transform_2, window_bounds = array<i64: 32, 64>}, {transform_indices = @transform_3, window_bounds = array<i64: 64, 32>}, {transform_indices = @transform_4, window_bounds = array<i64: 16, 32>}]} {
    %c0_i32 = arith.constant 0 : i32
    %0 = arith.cmpi eq, %arg1, %c0_i32 : i32
    %1 = arith.extui %0 : i1 to i32
    %c0_i32_0 = arith.constant 0 : i32
    %2 = arith.cmpi ne, %1, %c0_i32_0 : i32
    scf.if %2 {
      %cst_17 = arith.constant 0.000000e+00 : f32
      %23 = vector.broadcast %cst_17 : f32 to vector<16x32xf32>
      %c0_18 = arith.constant 0 : index
      %c0_19 = arith.constant 0 : index
      %24 = vector.load %arg7[%c0_18, %c0_19] : memref<16x32xf32, #tpu.memory_space<vmem>>, vector<16x32xf32>
      tpu.vector_store %arg7[%c0_18, %c0_19], %23 {strides = array<i32>} : memref<16x32xf32, #tpu.memory_space<vmem>>, vector<16x32xf32>,
    } else {
    }
    %c0 = arith.constant 0 : index
    %c0_1 = arith.constant 0 : index
    %3 = vector.load %arg2[%c0, %c0_1] : memref<16x32xf32, #tpu.memory_space<vmem>>, vector<16x32xf32>
    %c0_2 = arith.constant 0 : index
    %c0_3 = arith.constant 0 : index
    %4 = vector.load %arg3[%c0_2, %c0_3] : memref<32x64xf32, #tpu.memory_space<vmem>>, vector<32x64xf32>
    %cst = arith.constant dense<0.000000e+00> : vector<16x64xf32>
    %5 = tpu.matmul %3, %4, %cst {dimension_numbers = #tpu.dot_dimension_numbers<[1], [0], [0], [1], [0, 0, 1, 1], [], []>} : vector<16x32xf32>, vector<32x64xf32>, vector<16x64xf32> -> vector<16x64xf32>
    %c0_4 = arith.constant 0 : index
    %c0_5 = arith.constant 0 : index
    %6 = vector.load %arg4[%c0_4, %c0_5] : memref<32x64xf32, #tpu.memory_space<vmem>>, vector<32x64xf32>
    %cst_6 = arith.constant dense<0.000000e+00> : vector<16x64xf32>
    %7 = tpu.matmul %3, %6, %cst_6 {dimension_numbers = #tpu.dot_dimension_numbers<[1], [0], [0], [1], [0, 0, 1, 1], [], []>} : vector<16x32xf32>, vector<32x64xf32>, vector<16x64xf32> -> vector<16x64xf32>
    %8 = arith.negf %5 : vector<16x64xf32>
    %9 = math.exp %8 : vector<16x64xf32>
    %cst_7 = arith.constant 1.000000e+00 : f32
    %10 = vector.broadcast %cst_7 : f32 to vector<16x64xf32>
    %11 = arith.addf %10, %9 : vector<16x64xf32>
    %12 = arith.divf %10, %11 : vector<16x64xf32>
    %13 = arith.mulf %5, %12 : vector<16x64xf32>
    %14 = arith.mulf %13, %7 : vector<16x64xf32>
    %c0_8 = arith.constant 0 : index
    %c0_9 = arith.constant 0 : index
    %15 = vector.load %arg5[%c0_8, %c0_9] : memref<64x32xf32, #tpu.memory_space<vmem>>, vector<64x32xf32>
    %cst_10 = arith.constant dense<0.000000e+00> : vector<16x32xf32>
    %16 = tpu.matmul %14, %15, %cst_10 {dimension_numbers = #tpu.dot_dimension_numbers<[1], [0], [0], [1], [0, 0, 1, 1], [], []>} : vector<16x64xf32>, vector<64x32xf32>, vector<16x32xf32> -> vector<16x32xf32>
    %c0_11 = arith.constant 0 : index
    %c0_12 = arith.constant 0 : index
    %17 = vector.load %arg7[%c0_11, %c0_12] : memref<16x32xf32, #tpu.memory_space<vmem>>, vector<16x32xf32>
    %18 = arith.addf %17, %16 : vector<16x32xf32>
    %c0_13 = arith.constant 0 : index
    %c0_14 = arith.constant 0 : index
    %19 = vector.load %arg7[%c0_13, %c0_14] : memref<16x32xf32, #tpu.memory_space<vmem>>, vector<16x32xf32>
    tpu.vector_store %arg7[%c0_13, %c0_14], %18 {strides = array<i32>} : memref<16x32xf32, #tpu.memory_space<vmem>>, vector<16x32xf32>,
    %c0_i32_15 = arith.constant 0 : i32
    %20 = arith.cmpi eq, %arg1, %c0_i32_15 : i32
    %21 = arith.extui %20 : i1 to i32
    %c0_i32_16 = arith.constant 0 : i32
    %22 = arith.cmpi ne, %21, %c0_i32_16 : i32
    scf.if %22 {
      %c0_17 = arith.constant 0 : index
      %c0_18 = arith.constant 0 : index
      %23 = vector.load %arg7[%c0_17, %c0_18] : memref<16x32xf32, #tpu.memory_space<vmem>>, vector<16x32xf32>
      %c0_19 = arith.constant 0 : index
      %c0_20 = arith.constant 0 : index
      %24 = vector.load %arg6[%c0_19, %c0_20] : memref<16x32xf32, #tpu.memory_space<vmem>>, vector<16x32xf32>
      tpu.vector_store %arg6[%c0_19, %c0_20], %23 {strides = array<i32>} : memref<16x32xf32, #tpu.memory_space<vmem>>, vector<16x32xf32>,
    } else {
    }
    return
  }
  func.func @transform_0(%arg0: i32, %arg1: i32) -> (i32, i32) {
    %c0_i32 = arith.constant 0 : i32
    %c0_i32_0 = arith.constant 0 : i32
    return %arg0, %c0_i32 : i32, i32
  }
  func.func @transform_1(%arg0: i32, %arg1: i32) -> (i32, i32) {
    %c0_i32 = arith.constant 0 : i32
    %c0_i32_0 = arith.constant 0 : i32
    return %c0_i32, %arg1 : i32, i32
  }
  func.func @transform_2(%arg0: i32, %arg1: i32) -> (i32, i32) {
    %c0_i32 = arith.constant 0 : i32
    %c0_i32_0 = arith.constant 0 : i32
    return %c0_i32, %arg1 : i32, i32
  }
  func.func @transform_3(%arg0: i32, %arg1: i32) -> (i32, i32) {
    %c0_i32 = arith.constant 0 : i32
    %c0_i32_0 = arith.constant 0 : i32
    return %arg1, %c0_i32 : i32, i32
  }
  func.func @transform_4(%arg0: i32, %arg1: i32) -> (i32, i32) {
    %c0_i32 = arith.constant 0 : i32
    %c0_i32_0 = arith.constant 0 : i32
    return %arg0, %c0_i32 : i32, i32
  }
}

</mosaic_0001>

<bundles_post_ra>
// kernel: tpu_custom_call.1
= control target key start
LH: loop header
LB: loop body
LE: loop exit
PB: predicated region body
PF: predicated region fallthrough
CT: control target
= control target key end

     0   :  { %s351_s0 = inlined_call_operand.vmem [shape: f32[16,32], index: 0, kind: input, shape index: {}]   ;;  %s352_s1 = inlined_call_operand.vmem [shape: f32[32,64], index: 1, kind: input, shape index: {}]   ;;  %s353_s2 = inlined_call_operand.vmem [shape: f32[32,64], index: 2, kind: input, shape index: {}]   ;;  %s354_s3 = inlined_call_operand.vmem [shape: f32[64,32], index: 3, kind: input, shape index: {}]   ;;  %s355_s4 = inlined_call_operand.hbm [shape: f32[16,32], index: 4, kind: output, shape index: {}]  }
   0x1   :  { %v30_v0 = vld [vmem:[%s352_s1 + $0x18] sm:$0xff]  ;;  %v29_v1 = vld [vmem:[%s352_s1 + $0x10] sm:$0xff]  ;;  %v28_v2 = vld [vmem:[%s352_s1 + $0x8] sm:$0xff] }
   0x2   :  { %50 = vmatpush.msra.mxu0 %v30_v0  ;;  %v64_v3 = vld [vmem:[%s353_s2 + $0x18] sm:$0xff]  ;;  %v63_v4 = vld [vmem:[%s353_s2 + $0x10] sm:$0xff] }
   0x3   :  { %77 = vmatpush.msra.mxu1 %v64_v3 }
   0x4   :  { %51 = vmatpush.msra.mxu0 %v29_v1 }
   0x5   :  { %9 = vsyncpa [#allocation4], 0  ;;  %v27_v5 = vld [vmem:[%s352_s1] sm:$0xff]  ;;  %v62_v6 = vld [vmem:[%s353_s2 + $0x8] sm:$0xff]  ;;  %vm22_vm0 = vcmask 261120   ;;  %78 = vmatpush.msra.mxu1 %v63_v4  ;;  %v253_v24 = vmov 0.0  }
   0x6   :  { %52 = vmatpush.msra.mxu0 %v28_v2  ;;  %v25_v7 = vld [vmem:[%s351_s0] sm:$0xff]  ;;  %v26_v9 = vld [vmem:[%s351_s0 + $0x8] sm:$0xff]  ;;  %v137_v10 = vld [vmem:[%s354_s3 + $0x38] sm:$0xff]  ;;  %23 = vst.msk [vmem:[#allocation2] sm:$0xff] %vm22_vm0, %v253_v24  ;;  %vm138_vm5 = vcmask 523264   ;;  %s187_s25 = sshll.u32 %s355_s4, 4  ;;  %s188_s25 = int_to_ptr.hbm [resolvable:$true] %s187_s25 }
   0x7   :  { %v61_v8 = vld [vmem:[%s353_s2] sm:$0xff]  ;;  %79 = vmatpush.msra.mxu1 %v62_v6  ;;  %153 = vmatpush.msra.mxu2 %v137_v10  ;;  %v136_v11 = vld [vmem:[%s354_s3 + $0x30] sm:$0xff]  ;;  %v135_v12 = vld [vmem:[%s354_s3 + $0x28] sm:$0xff]  ;;  %24 = vst.msk [vmem:[#allocation2 + $0x8] sm:$0xff] %vm22_vm0, %v253_v24  ;;  %s255_s26 = smov 128   ;;  %s256_s27 = smov 8  }
   0x8   :  { %53 = vmatpush.msra.mxu0 %v27_v5  ;;  %207 = vmatpush.msra.mxu3 %v137_v10  ;;  %v134_v13 = vld [vmem:[%s354_s3 + $0x20] sm:$0xff]  ;;  %v133_v14 = vld [vmem:[%s354_s3 + $0x18] sm:$0xff]  ;;  %v132_v15 = vld [vmem:[%s354_s3 + $0x10] sm:$0xff] }
   0x9   :  { %199 = vmatmul.msk.f32.vlgmr.msra.gmra.mxu0 %vm22_vm0, %v25_v7  ;;  %80 = vmatpush.msra.mxu1 %v61_v8  ;;  %v131_v16 = vld [vmem:[%s354_s3 + $0x8] sm:$0xff]  ;;  %v130_v17 = vld [vmem:[%s354_s3] sm:$0xff]  ;;  %s254_s3 = smov [#allocation3]  }
   0xa   :  { %201 = vmatmul.msk.f32.vlgmr.msra.gmra.mxu1 %vm22_vm0, %v25_v7  ;;  %154 = vmatpush.msra.mxu2 %v136_v11  ;;  %s185_s22 = sshll.u32 %s254_s3, 4  ;;  %s186_s22 = int_to_ptr.vmem [resolvable:$true] %s185_s22 }
   0xb   :  { %208 = vmatpush.msra.mxu3 %v136_v11 }
   0xc   :  { %155 = vmatpush.msra.mxu2 %v135_v12 }
   0xd   :  { %209 = vmatpush.msra.mxu3 %v135_v12  ;;  %v168_v53 = vld [vmem:[#allocation2] sm:$0xff] }
   0xe   :  { %156 = vmatpush.msra.mxu2 %v134_v13  ;;  %v169_v56 = vld [vmem:[#allocation2 + $0x8] sm:$0xff] }
   0xf   :  { %210 = vmatpush.msra.mxu3 %v134_v13 }
  0x10   :  { %157 = vmatpush.msra.mxu2 %v133_v14 }
  0x11   :  { %200 = vmatmul.msk.f32.gmra.mxu0 %vm22_vm0, %v26_v9  ;;  %211 = vmatpush.msra.mxu3 %v133_v14 }
  0x12   :  { %202 = vmatmul.msk.f32.gmra.mxu1 %vm22_vm0, %v26_v9  ;;  %158 = vmatpush.msra.mxu2 %v132_v15 }
  0x13   :  { %212 = vmatpush.msra.mxu3 %v132_v15 }
  0x14   :  { %159 = vmatpush.msra.mxu2 %v131_v16 }
  0x15   :  { %213 = vmatpush.msra.mxu3 %v131_v16 }
  0x16   :  { %160 = vmatpush.msra.mxu2 %v130_v17 }
  0x17   :  { %214 = vmatpush.msra.mxu3 %v130_v17 }
  0x86   :  { %v55_v18 = vpop.f32.mrf.mxu0 }
  0x87   :  { %v203_v19 = vmul.f32 -1.442695, %v55_v18  ;;  %v82_v36 = vpop.f32.mrf.mxu1 }
  0x89   :  { %219 = vpow2.f32 %v203_v19 }
  0x8e   :  { %v58_v20 = vpop.f32.mrf.mxu0 }
  0x8f   :  { %v220_v21 = vpop.eup %219  ;;  %v204_v22 = vmul.f32 -1.442695, %v58_v20  ;;  %v85_v50 = vpop.f32.mrf.mxu1 }
  0x90   :  { %v94_v23 = vadd.f32 1.0, %v220_v21 }
  0x91   :  { %221 = vpow2.f32 %v204_v22 }
  0x92   :  { %223 = vrcp.f32 %v94_v23  ;;  %v107_v30 = vand.u32 2147483648, %v94_v23  ;;  %v105_v32 = vand.u32 2147483647, %v94_v23  ;;  %vm101_vm2 = vweird.f32 %v94_v23 }
  0x94   :  { %v108_v35 = vor.u32 1.1754944e-38, %v107_v30  ;;  %vm106_vm4 = vcmp.eq.f32.partialorder %v105_v32, 8.507059e+37 }
  0x97   :  { %v222_v25 = vpop.eup %221 }
  0x98   :  { %v224_v26 = vpop.eup %223  ;;  %v95_v27 = vadd.f32 1.0, %v222_v25 }
  0x99   :  { %v97_v28 = vmul.f32 %v224_v26, %v94_v23  ;;  %vm102_vm1 = vweird.f32 %v224_v26 }
  0x9a   :  { %225 = vrcp.f32 %v95_v27  ;;  %vm103_vm3 = vmor %vm101_vm2, %vm102_vm1  ;;  %v122_v42 = vand.u32 2147483648, %v95_v27  ;;  %v120_v44 = vand.u32 2147483647, %v95_v27  ;;  %vm116_vm7 = vweird.f32 %v95_v27 }
  0x9b   :  { %v98_v29 = vsub.f32 1.0, %v97_v28 }
  0x9c   :  { %v123_v47 = vor.u32 1.1754944e-38, %v122_v42  ;;  %vm121_vm9 = vcmp.eq.f32.partialorder %v120_v44, 8.507059e+37 }
  0x9d   :  { %v99_v31 = vmul.f32 %v224_v26, %v98_v29 }
  0x9f   :  { %v100_v33 = vadd.f32 %v224_v26, %v99_v31 }
  0xa0   :  { %v226_v34 = vpop.eup %225 }
  0xa1   :  { %v104_v37 = vsel %vm103_vm3, %v224_v26, %v100_v33  ;;  %v112_v38 = vmul.f32 %v226_v34, %v95_v27  ;;  %vm117_vm6 = vweird.f32 %v226_v34 }
  0xa2   :  { %v109_v39 = vsel %vm106_vm4, %v108_v35, %v104_v37  ;;  %vm118_vm8 = vmor %vm116_vm7, %vm117_vm6 }
  0xa3   :  { %v126_v40 = vmul.f32 %v109_v39, %v55_v18  ;;  %v113_v41 = vsub.f32 1.0, %v112_v38 }
  0xa5   :  { %v114_v43 = vmul.f32 %v226_v34, %v113_v41  ;;  %v128_v45 = vmul.f32 %v126_v40, %v82_v36 }
  0xa7   :  { %v115_v46 = vadd.f32 %v226_v34, %v114_v43  ;;  %205 = vmatmul.msk.f32.vlgmr.msra.gmra.mxu2 %vm138_vm5, %v128_v45 }
  0xa9   :  { %v119_v48 = vsel %vm118_vm8, %v226_v34, %v115_v46 }
  0xaa   :  { %v124_v49 = vsel %vm121_vm9, %v123_v47, %v119_v48 }
  0xab   :  { %v127_v51 = vmul.f32 %v124_v49, %v58_v20 }
  0xad   :  { %v129_v52 = vmul.f32 %v127_v51, %v85_v50 }
  0xaf   :  { %206 = vmatmul.msk.f32.vlgmr.msra.gmra.mxu3 %vm138_vm5, %v129_v52 }
 0x12a   :  { %v162_v54 = vpop.f32.mrf.mxu2 }
 0x12b   :  { %v170_v55 = vadd.f32 %v168_v53, %v162_v54 }
 0x12d   :  { %172 = vst.msk [vmem:[#allocation2] sm:$0xff] %vm22_vm0, %v170_v55 }
 0x132   :  { %v165_v57 = vpop.f32.mrf.mxu3 }
 0x133   :  { %v171_v58 = vadd.f32 %v169_v56, %v165_v57 }
 0x134   :  { %v177_v59 = vld [vmem:[#allocation2] sm:$0xff] }
 0x135   :  { %173 = vst.msk [vmem:[#allocation2 + $0x8] sm:$0xff] %vm22_vm0, %v171_v58 }
 0x136   :  { %179 = vst.msk [vmem:[#allocation3] sm:$0xff] %vm22_vm0, %v177_v59 }
 0x13c   :  { %v178_v60 = vld [vmem:[#allocation2 + $0x8] sm:$0xff] }
 0x13d   :  { %180 = vst.msk [vmem:[#allocation3 + $0x8] sm:$0xff] %vm22_vm0, %v178_v60 }
 0x13e   :  { %193 = dma.vmem_to_hbm [thread:$0]  %s186_s22, 256, %s188_s25, [#allocation4], %s255_s26, %s255_s26, %s256_s27  }
 0x13f   :  { %251 = dma.done.wait [#allocation4], 256  }
 0x140   :  { %252 = vsyncadd [#allocation4], 4294967040 }
 0x141   :  { %198 = vsyncpa [#allocation4], 1 }

</bundles_post_ra>
